<compile_context>
chip_gen: v7x
topology: tpu7x:2x2x1
jax: 0.10.0
libtpu: 0.0.40
codegen_flags: <defaults>
</compile_context>

<pallas_src>
import jax
import jax.numpy as jnp
from jax.experimental import pallas as pl
from jax.experimental.pallas import tpu as pltpu


def _mlp_kernel(x_ref, w1_ref, b1_ref, w2_ref, b2_ref, o_ref):
    # x_ref : (K, TL)            features on sublanes, lanes = vertices (or B*N)
    # w1_ref: (hidden, K)        torch (out, in) layout, used directly as MXU LHS
    # b1_ref: (hidden, 1)        column bias, broadcasts along lanes
    # w2_ref: (horizon, hidden)  torch (out, in) layout
    # b2_ref: (horizon, 1)
    # o_ref : (horizon, TL)      lane-dense output tile
    h = jnp.dot(w1_ref[...], x_ref[...], preferred_element_type=jnp.float32)
    h = jnp.maximum(h + b1_ref[...], 0.0)                      # relu, f32 (hidden, TL)
    out = jnp.dot(w2_ref[...], h, preferred_element_type=jnp.float32)
    o_ref[...] = (out + b2_ref[...]).astype(o_ref.dtype)       # (horizon, TL)


def _round_up(a, m):
    return (a + m - 1) // m * m


def _pick_lane_tile(total_lanes, *, k, hidden, horizon, x_itemsize,
                    vertex_tile, vmem_budget_bytes, want_two_steps):
    """Largest legal lane tile that fits the VMEM budget (multiple of 128 or full)."""
    # Bytes per lane that scale with the tile: double-buffered x, the f32
    # (hidden, TL) intermediate (+ one buffer of headroom), double-buffered out.
    per_lane = 2 * k * x_itemsize + 2 * hidden * 4 + 2 * horizon * 4
    cap = max(128, (vmem_budget_bytes // per_lane) // 128 * 128)
    cap = min(cap, _round_up(vertex_tile, 128))
    if total_lanes <= cap:
        if want_two_steps and total_lanes > 256:
            # Give v7x's two TensorCores at least one tile each.
            return _round_up(-(-total_lanes // 2), 128)
        return total_lanes          # full extent is always a legal block dim
    return cap                      # multiple of 128; last tile may be partial (masked)


def output_layer_forward(x, params, *, num_of_vertices, history, in_dim,
                         hidden_dim, horizon, vertex_tile=8192,
                         use_bf16_inputs=False,
                         vmem_budget_bytes=24 * 1024 * 1024,
                         vmem_limit_bytes=48 * 1024 * 1024):
    """x: (B, Tin, N, Cin) -> (B, horizon, N) float32."""
    w1, b1, w2, b2 = params          # torch layouts: w1 (hidden, K), w2 (horizon, hidden)
    B = x.shape[0]
    N = num_of_vertices
    K = history * in_dim

    stream_dtype = jnp.bfloat16 if use_bf16_inputs else jnp.float32
    xs = x.astype(stream_dtype)                       # cast BEFORE the permute (cheaper)
    w1s = w1.astype(stream_dtype)                     # VMEM-resident, streamed once
    b1c = b1.reshape(hidden_dim, 1).astype(jnp.float32)
    w2f = w2.astype(jnp.float32)
    b2c = b2.reshape(horizon, 1).astype(jnp.float32)
    x_itemsize = jnp.dtype(stream_dtype).itemsize

    flops = 2 * B * N * (K * hidden_dim + hidden_dim * horizon)
    bytes_accessed = (x_itemsize * B * K * N + 4 * B * horizon * N
                      + x_itemsize * hidden_dim * K + 4 * hidden_dim
                      + 4 * horizon * hidden_dim + 4 * horizon)
    cost = pl.CostEstimate(flops=flops, transcendentals=0,
                           bytes_accessed=bytes_accessed)

    if N >= 1024:
        # ---- Large-N path: per-batch grid, writes (B, horizon, N) directly. ----
        TN = _pick_lane_tile(N, k=K, hidden=hidden_dim, horizon=horizon,
                             x_itemsize=x_itemsize, vertex_tile=vertex_tile,
                             vmem_budget_bytes=vmem_budget_bytes,
                             want_two_steps=(B == 1))
        n_tiles = pl.cdiv(N, TN)
        # (B,T,N,C) -> (B,T,C,N) -> (B,K,N); feature order k = t*C + c matches torch.
        xT = jnp.transpose(xs, (0, 1, 3, 2)).reshape(B, K, N)
        out = pl.pallas_call(
            _mlp_kernel,
            out_shape=jax.ShapeDtypeStruct((B, horizon, N), jnp.float32),
            grid=(B, n_tiles),
            in_specs=[
                pl.BlockSpec((None, K, TN), lambda b, j: (b, 0, j)),
                pl.BlockSpec((hidden_dim, K), lambda b, j: (0, 0)),
                pl.BlockSpec((hidden_dim, 1), lambda b, j: (0, 0)),
                pl.BlockSpec((horizon, hidden_dim), lambda b, j: (0, 0)),
                pl.BlockSpec((horizon, 1), lambda b, j: (0, 0)),
            ],
            out_specs=pl.BlockSpec((None, horizon, TN), lambda b, j: (b, 0, j)),
            compiler_params=pltpu.CompilerParams(
                dimension_semantics=("parallel", "parallel"),
                vmem_limit_bytes=vmem_limit_bytes),
            cost_estimate=cost,
        )(xT, w1s, b1c, w2f, b2c)
        return out

    # ---- Small-N path: fold batch into the lane axis for big, lane-dense tiles. ----
    M = B * N
    TM = _pick_lane_tile(M, k=K, hidden=hidden_dim, horizon=horizon,
                         x_itemsize=x_itemsize, vertex_tile=vertex_tile,
                         vmem_budget_bytes=vmem_budget_bytes,
                         want_two_steps=True)
    n_tiles = pl.cdiv(M, TM)
    # (B,T,N,C) -> (T,C,B,N) -> (K, B*N); k = t*C + c, lane m = b*N + n.
    xT = jnp.transpose(xs, (1, 3, 0, 2)).reshape(K, M)
    outT = pl.pallas_call(
        _mlp_kernel,
        out_shape=jax.ShapeDtypeStruct((horizon, M), jnp.float32),
        grid=(n_tiles,),
        in_specs=[
            pl.BlockSpec((K, TM), lambda j: (0, j)),
            pl.BlockSpec((hidden_dim, K), lambda j: (0, 0)),
            pl.BlockSpec((hidden_dim, 1), lambda j: (0, 0)),
            pl.BlockSpec((horizon, hidden_dim), lambda j: (0, 0)),
            pl.BlockSpec((horizon, 1), lambda j: (0, 0)),
        ],
        out_specs=pl.BlockSpec((horizon, TM), lambda j: (0, j)),
        compiler_params=pltpu.CompilerParams(
            dimension_semantics=("parallel",),
            vmem_limit_bytes=vmem_limit_bytes),
        cost_estimate=cost,
    )(xT, w1s, b1c, w2f, b2c)
    # (horizon, B*N) -> (B, horizon, N): cheap (~horizon/K of the input bytes).
    return jnp.transpose(outT.reshape(horizon, B, N), (1, 0, 2))


def _reference(x, params, *, num_of_vertices, history, in_dim, hidden_dim, horizon):
    w1, b1, w2, b2 = params
    B = x.shape[0]
    xr = jnp.transpose(x, (0, 2, 1, 3)).reshape(B, num_of_vertices, history * in_dim)
    out1 = jax.nn.relu(xr @ w1.T + b1)
    out2 = out1 @ w2.T + b2
    return jnp.transpose(out2, (0, 2, 1))


if __name__ == "__main__":
    # Small, forward-consistent shapes.
    B, history, N, in_dim = 2, 8, 16, 4
    hidden_dim, horizon = 32, 12
    K = history * in_dim

    key = jax.random.PRNGKey(0)
    kx, kw1, kb1, kw2, kb2, kx2 = jax.random.split(key, 6)

    x = jax.random.normal(kx, (B, history, N, in_dim), dtype=jnp.float32)

    # Torch Linear shapes: weight (out, in), bias (out,).
    w1 = jax.random.normal(kw1, (hidden_dim, K), dtype=jnp.float32) * 0.1
    b1 = jax.random.normal(kb1, (hidden_dim,), dtype=jnp.float32) * 0.1
    w2 = jax.random.normal(kw2, (horizon, hidden_dim), dtype=jnp.float32) * 0.1
    b2 = jax.random.normal(kb2, (horizon,), dtype=jnp.float32) * 0.1
    params = (w1, b1, w2, b2)

    kwargs = dict(num_of_vertices=N, history=history, in_dim=in_dim,
                  hidden_dim=hidden_dim, horizon=horizon)

    # 1) Small-N merged-batch path, f32 streaming (exact parity with torch).
    out = jax.block_until_ready(output_layer_forward(x, params, **kwargs))
    ref = _reference(x, params, **kwargs)
    assert out.shape == (B, horizon, N), out.shape
    assert jnp.allclose(out, ref, atol=1e-5, rtol=1e-5), "f32 mismatch vs reference"

    # 2) Same path with bf16 streaming of x / W1 (f32 accumulation) — looser tol.
    out_bf16 = jax.block_until_ready(
        output_layer_forward(x, params, use_bf16_inputs=True, **kwargs))
    assert jnp.allclose(out_bf16, ref, atol=2e-2, rtol=2e-2), "bf16 mismatch vs reference"

    # 3) Large-N per-batch path (B=1 forces the >=2-tile lane split for megacore).
    N2 = 1024
    x2 = jax.random.normal(kx2, (1, history, N2, in_dim), dtype=jnp.float32)
    kwargs2 = dict(num_of_vertices=N2, history=history, in_dim=in_dim,
                   hidden_dim=hidden_dim, horizon=horizon)
    out2 = jax.block_until_ready(output_layer_forward(x2, params, **kwargs2))
    ref2 = _reference(x2, params, **kwargs2)
    assert out2.shape == (1, horizon, N2), out2.shape
    assert jnp.allclose(out2, ref2, atol=1e-4, rtol=1e-4), "large-N mismatch vs reference"

    print("KERNEL_OK")
</pallas_src>

<mosaic_0001>
module attributes {stable_mosaic.version = 11 : i64} {
  func.func @_mlp_kernel(%arg0: i32, %arg1: memref<32x32xf32, #tpu.memory_space<vmem>>, %arg2: memref<32x32xf32, #tpu.memory_space<vmem>>, %arg3: memref<32x1xf32, #tpu.memory_space<vmem>>, %arg4: memref<12x32xf32, #tpu.memory_space<vmem>>, %arg5: memref<12x1xf32, #tpu.memory_space<vmem>>, %arg6: memref<12x32xf32, #tpu.memory_space<vmem>>) attributes {dimension_semantics = [#tpu.dimension_semantics<parallel>], iteration_bounds = array<i64: 1>, scalar_prefetch = 0 : i64, scratch_operands = 0 : i64, tpu.core_type = #tpu.core_type<tc>, window_params = [{transform_indices = @transform_0, window_bounds = array<i64: 32, 32>}, {pipeline_mode = #tpu.pipeline_mode<synchronous>, transform_indices = @transform_1, window_bounds = array<i64: 32, 32>}, {pipeline_mode = #tpu.pipeline_mode<synchronous>, transform_indices = @transform_2, window_bounds = array<i64: 32, 1>}, {pipeline_mode = #tpu.pipeline_mode<synchronous>, transform_indices = @transform_3, window_bounds = array<i64: 12, 32>}, {pipeline_mode = #tpu.pipeline_mode<synchronous>, transform_indices = @transform_4, window_bounds = array<i64: 12, 1>}, {transform_indices = @transform_5, window_bounds = array<i64: 12, 32>}]} {
    %c0 = arith.constant 0 : index
    %c0_0 = arith.constant 0 : index
    %0 = vector.load %arg2[%c0, %c0_0] : memref<32x32xf32, #tpu.memory_space<vmem>>, vector<32x32xf32>
    %c0_1 = arith.constant 0 : index
    %c0_2 = arith.constant 0 : index
    %1 = vector.load %arg1[%c0_1, %c0_2] : memref<32x32xf32, #tpu.memory_space<vmem>>, vector<32x32xf32>
    %cst = arith.constant dense<0.000000e+00> : vector<32x32xf32>
    %2 = tpu.matmul %0, %1, %cst {dimension_numbers = #tpu.dot_dimension_numbers<[1], [0], [0], [1], [0, 0, 1, 1], [], []>} : vector<32x32xf32>, vector<32x32xf32>, vector<32x32xf32> -> vector<32x32xf32>
    %c0_3 = arith.constant 0 : index
    %c0_4 = arith.constant 0 : index
    %3 = vector.load %arg3[%c0_3, %c0_4] : memref<32x1xf32, #tpu.memory_space<vmem>>, vector<32x1xf32>
    %4 = vector.broadcast %3 : vector<32x1xf32> to vector<32x32xf32>
    %5 = arith.addf %2, %4 : vector<32x32xf32>
    %cst_5 = arith.constant 0.000000e+00 : f32
    %6 = vector.broadcast %cst_5 : f32 to vector<32x32xf32>
    %7 = arith.maximumf %5, %6 : vector<32x32xf32>
    %c0_6 = arith.constant 0 : index
    %c0_7 = arith.constant 0 : index
    %8 = vector.load %arg4[%c0_6, %c0_7] : memref<12x32xf32, #tpu.memory_space<vmem>>, vector<12x32xf32>
    %cst_8 = arith.constant dense<0.000000e+00> : vector<12x32xf32>
    %9 = tpu.matmul %8, %7, %cst_8 {dimension_numbers = #tpu.dot_dimension_numbers<[1], [0], [0], [1], [0, 0, 1, 1], [], []>} : vector<12x32xf32>, vector<32x32xf32>, vector<12x32xf32> -> vector<12x32xf32>
    %c0_9 = arith.constant 0 : index
    %c0_10 = arith.constant 0 : index
    %10 = vector.load %arg5[%c0_9, %c0_10] : memref<12x1xf32, #tpu.memory_space<vmem>>, vector<12x1xf32>
    %11 = vector.broadcast %10 : vector<12x1xf32> to vector<12x32xf32>
    %12 = arith.addf %9, %11 : vector<12x32xf32>
    %c0_11 = arith.constant 0 : index
    %c0_12 = arith.constant 0 : index
    %13 = vector.load %arg6[%c0_11, %c0_12] : memref<12x32xf32, #tpu.memory_space<vmem>>, vector<12x32xf32>
    tpu.vector_store %arg6[%c0_11, %c0_12], %12 {strides = array<i32>} : memref<12x32xf32, #tpu.memory_space<vmem>>, vector<12x32xf32>,
    return
  }
  func.func @transform_0(%arg0: i32) -> (i32, i32) {
    %c0_i32 = arith.constant 0 : i32
    %c0_i32_0 = arith.constant 0 : i32
    return %c0_i32, %arg0 : i32, i32
  }
  func.func @transform_1(%arg0: i32) -> (i32, i32) {
    %c0_i32 = arith.constant 0 : i32
    %c0_i32_0 = arith.constant 0 : i32
    %c0_i32_1 = arith.constant 0 : i32
    return %c0_i32, %c0_i32_0 : i32, i32
  }
  func.func @transform_2(%arg0: i32) -> (i32, i32) {
    %c0_i32 = arith.constant 0 : i32
    %c0_i32_0 = arith.constant 0 : i32
    %c0_i32_1 = arith.constant 0 : i32
    return %c0_i32, %c0_i32_0 : i32, i32
  }
  func.func @transform_3(%arg0: i32) -> (i32, i32) {
    %c0_i32 = arith.constant 0 : i32
    %c0_i32_0 = arith.constant 0 : i32
    %c0_i32_1 = arith.constant 0 : i32
    return %c0_i32, %c0_i32_0 : i32, i32
  }
  func.func @transform_4(%arg0: i32) -> (i32, i32) {
    %c0_i32 = arith.constant 0 : i32
    %c0_i32_0 = arith.constant 0 : i32
    %c0_i32_1 = arith.constant 0 : i32
    return %c0_i32, %c0_i32_0 : i32, i32
  }
  func.func @transform_5(%arg0: i32) -> (i32, i32) {
    %c0_i32 = arith.constant 0 : i32
    %c0_i32_0 = arith.constant 0 : i32
    return %c0_i32, %arg0 : i32, i32
  }
}

</mosaic_0001>

<bundles_post_ra>
// kernel: tpu_custom_call.1
= control target key start
LH: loop header
LB: loop body
LE: loop exit
PB: predicated region body
PF: predicated region fallthrough
CT: control target
= control target key end

     0   :  { %10 = vsyncpa [#allocation3], 0  ;;  %s508_s0 = inlined_call_operand.vmem [shape: f32[32,32], index: 0, kind: input, shape index: {}]   ;;  %s509_s1 = inlined_call_operand.hbm [shape: f32[32,32], index: 1, kind: input, shape index: {}]   ;;  %s510_s2 = inlined_call_operand.vmem [shape: f32[32,1], index: 2, kind: input, shape index: {}]   ;;  %s511_s3 = inlined_call_operand.vmem [shape: f32[12,32], index: 3, kind: input, shape index: {}]   ;;  %s512_s4 = inlined_call_operand.vmem [shape: f32[12,1], index: 4, kind: input, shape index: {}]   ;;  %s513_s5 = inlined_call_operand.hbm [shape: f32[12,32], index: 5, kind: output, shape index: {}]  }
   0x1   :  { %11 = vsyncpa [#allocation4], 0  ;;  %s400_s18 = smov [#allocation2]   ;;  %s352_s22 = scalar_lea.hbm %s509_s1, 512 }
   0x2   :  { %s19_s19 = sshll.u32 %s400_s18, 4  ;;  %p353_p0 = scmp.ne.s32.totalorder %s509_s1, %s352_s22  ;;  %s20_s19 = int_to_ptr.vmem [resolvable:$true] %s19_s19 }
   0x3   :  { %p356_p1 = scmp.lt.u32.totalorder %s352_s22, %s509_s1 }
   0x5   :  { %p358_p2 = pnand %p356_p1, %p353_p0 }
   0x7   :  { %361 = shalt.err (!%p358_p2)
}
   0x8   :  { %s362_s27 = scalar_lea.vmem %s20_s19, 512  ;;  %p367_p4 = scmp.lt.s32.totalorder %s20_s19, %s20_s19 }
   0x9   :  { %p363_p3 = scmp.ne.s32.totalorder %s20_s19, %s362_s27  ;;  %p368_p5 = scmp.lt.s32.totalorder %s362_s27, %s362_s27 }
   0xb   :  { %p369_p6 = por %p368_p5, %p367_p4 }
   0xd   :  { %p370_p7 = pnand %p369_p6, %p363_p3 }
   0xf   :  { %373 = shalt.err (!%p370_p7)
}
  0x10   :  { %s401_s28 = smov 128   ;;  %s402_s29 = smov 8  }
  0x11   :  { %25 = dma.hbm_to_vmem [thread:$0]  %s509_s1, 512, %s20_s19, [#allocation3], %s401_s28, %s401_s28, %s402_s29  }
  0x12   :  { %396 = dma.done.wait [#allocation3], 512  }
  0x13   :  { %397 = vsyncadd [#allocation3], 4294966784  ;;  %v403_v0 = vmov 0   ;;  %vm67_vm0 = vcmask 261120   ;;  %v39_v1 = vld [vmem:[%s508_s0] sm:$0xff]  ;;  %v40_v2 = vld [vmem:[%s508_s0 + $0x8] sm:$0xff] }
  0x14   :  { %350 = vset.pattern.permute.xlu0 %v403_v0  ;;  %351 = vset.pattern.permute.xlu1 %v403_v0  ;;  %v41_v3 = vld [vmem:[%s508_s0 + $0x10] sm:$0xff]  ;;  %v329_v4 = vpack.c.bf16 %v40_v2, %v39_v1  ;;  %v42_v5 = vld [vmem:[%s508_s0 + $0x18] sm:$0xff]  ;;  %v35_v6 = vld [vmem:[#allocation2] sm:$0xff]  ;;  %s404_s27 = smov [#allocation5]   ;;  %vm265_vm1 = vcmask 257024  }
  0x15   :  { %v333_v7 = vpack.c.bf16 %v42_v5, %v41_v3  ;;  %312 = vmatprep.mubr.msk.f32.mxu0 %vm67_vm0, %v35_v6  ;;  %v43_v8 = vld [vmem:[%s510_s2] sm:$0xff]  ;;  %v45_v9 = vld [vmem:[%s510_s2 + $0x10] sm:$0xff]  ;;  %v44_v10 = vld [vmem:[%s510_s2 + $0x8] sm:$0xff]  ;;  %s272_s30 = sshll.u32 %s404_s27, 4  ;;  %s273_s30 = int_to_ptr.vmem [resolvable:$true] %s272_s30 }
  0x16   :  { %330 = vmatprep.subr.bf16.mxu0 %v329_v4  ;;  %49 = vperm.xlu0 %350, %v43_v8   ;;  %v46_v11 = vld [vmem:[%s510_s2 + $0x18] sm:$0xff]  ;;  %v36_v12 = vld [vmem:[#allocation2 + $0x8] sm:$0xff]  ;;  %v171_v13 = vld [vmem:[%s512_s4] sm:$0xff]  ;;  %s374_s6 = scalar_lea.vmem %s273_s30, 256  ;;  %p379_p9 = scmp.lt.s32.totalorder %s273_s30, %s273_s30 }
  0x17   :  { %332 = vmatpush3.bf16.msra.mxu0 %v329_v4  ;;  %59 = vperm.xlu1 %351, %v45_v9   ;;  %v37_v14 = vld [vmem:[#allocation2 + $0x10] sm:$0xff]  ;;  %v172_v15 = vld [vmem:[%s512_s4 + $0x8] sm:$0xf]  ;;  %v38_v16 = vld [vmem:[#allocation2 + $0x18] sm:$0xff]  ;;  %p375_p8 = scmp.ne.s32.totalorder %s273_s30, %s374_s6  ;;  %p380_p10 = scmp.lt.s32.totalorder %s374_s6, %s374_s6 }
  0x18   :  { %334 = vmatprep.subr.bf16.mxu0 %v333_v7  ;;  %v169_v17 = vld [vmem:[%s511_s3] sm:$0xff]  ;;  %v170_v36 = vld [vmem:[%s511_s3 + $0x8] sm:$0xf] }
  0x19   :  { %326 = vmatprep.mubr.msk.f32.mxu1 %vm67_vm0, %v169_v17  ;;  %p381_p11 = por %p380_p10, %p379_p9 }
  0x1a   :  { %54 = vperm.xlu0 %350, %v44_v10  }
  0x1b   :  { %336 = vmatpush3.bf16.msra.mxu0 %v333_v7  ;;  %64 = vperm.xlu1 %351, %v46_v11   ;;  %p382_p12 = pnand %p381_p11, %p375_p8 }
  0x1e   :  { %313 = vmatmul.mubr.msk.f32.vlgmr.msra.gmra.mrb[0].mxu0 %vm67_vm0, %v36_v12  ;;  %175 = vperm.xlu0 %350, %v171_v13  }
  0x1f   :  { %315 = vmatprep.mubr.msk.f32.mxu0 %vm67_vm0, %v37_v14  ;;  %180 = vperm.xlu1 %351, %v172_v15  }
  0x22   :  { %316 = vmatmul.mubr.msk.f32.gmra.mrb[2].mxu0 %vm67_vm0, %v38_v16 }
  0x95   :  { %v50_v18 = vpop.permute.xlu0 %49 }
  0x96   :  { %v60_v19 = vpop.permute.xlu1 %59 }
  0x99   :  { %v55_v20 = vpop.permute.xlu0 %54 }
  0x9a   :  { %v65_v26 = vpop.permute.xlu1 %64 }
  0x9d   :  { %v176_v39 = vpop.permute.xlu0 %175 }
  0x9e   :  { %v181_v37 = vpop.permute.xlu1 %180 }
  0xf1   :  { %v314_v21 = vpop.f32.mrb[0].mxu0 }
  0xf2   :  { %v152_v22 = vadd.f32 %v314_v21, %v55_v20  ;;  %v146_v23 = vpop.f32.mrb[1].mxu0 }
  0xf3   :  { %v147_v24 = vadd.f32 %v146_v23, %v50_v18 }
  0xf4   :  { %v166_v25 = vmax.f32 %v152_v22, 0.0 }
  0xf5   :  { %v165_v27 = vmax.f32 %v147_v24, 0.0  ;;  %v317_v28 = vpop.f32.mrb[2].mxu0 }
  0xf6   :  { %v162_v29 = vadd.f32 %v317_v28, %v65_v26  ;;  %v156_v30 = vpop.f32.mrb[3].mxu0 }
  0xf7   :  { %v157_v31 = vadd.f32 %v156_v30, %v60_v19  ;;  %v337_v32 = vpack.c.bf16 %v166_v25, %v165_v27 }
  0xf8   :  { %v168_v33 = vmax.f32 %v162_v29, 0.0 }
  0xf9   :  { %v167_v34 = vmax.f32 %v157_v31, 0.0  ;;  %338 = vmatprep.subr.bf16.mxu1 %v337_v32 }
  0xfa   :  { %340 = vmatpush3.bf16.msra.mxu1 %v337_v32 }
  0xfb   :  { %v341_v35 = vpack.c.bf16 %v168_v33, %v167_v34 }
  0xfd   :  { %342 = vmatprep.subr.bf16.mxu1 %v341_v35 }
  0xfe   :  { %344 = vmatpush3.bf16.msra.mxu1 %v341_v35 }
 0x101   :  { %327 = vmatmul.mubr.msk.f32.vlgmr.msra.gmra.mrb[0].mxu1 %vm67_vm0, %v170_v36 }
 0x1d4   :  { %v328_v38 = vpop.f32.mrb[0].mxu1 }
 0x1d5   :  { %v261_v40 = vadd.f32 %v328_v38, %v181_v37  ;;  %v255_v41 = vpop.f32.mrb[1].mxu1 }
 0x1d6   :  { %v256_v42 = vadd.f32 %v255_v41, %v176_v39 }
 0x1d7   :  { %266 = vst.msk [vmem:[#allocation5 + $0x8] sm:$0xf] %vm265_vm1, %v261_v40 }
 0x1d8   :  { %264 = vst.msk [vmem:[#allocation5] sm:$0xff] %vm67_vm0, %v256_v42 }
 0x1d9   :  { %385 = shalt.err (!%p382_p12)
}
 0x1da   :  { %s386_s8 = scalar_lea.hbm %s513_s5, 256 }
 0x1db   :  { %p387_p13 = scmp.ne.s32.totalorder %s513_s5, %s386_s8  ;;  %p390_p0 = scmp.lt.u32.totalorder %s386_s8, %s513_s5 }
 0x1dd   :  { %p392_p1 = pnand %p390_p0, %p387_p13 }
 0x1df   :  { %395 = shalt.err (!%p392_p1)
}
 0x1e0   :  { %278 = dma.vmem_to_hbm [thread:$0]  %s273_s30, 256, %s513_s5, [#allocation4], %s401_s28, %s401_s28, %s402_s29  }
 0x1e1   :  { %398 = dma.done.wait [#allocation4], 256  }
 0x1e2   :  { %399 = vsyncadd [#allocation4], 4294967040 }
 0x1e3   :  { %282 = vsyncpa [#allocation3], 1 }
 0x1e4   :  { %283 = vsyncpa [#allocation4], 1 }

</bundles_post_ra>
